<compile_context>
chip_gen: v6e
topology: v6e:2x2x1
jax: 0.10.0
libtpu: 0.0.40
codegen_flags: <defaults>
</compile_context>

<pallas_src>
import functools

import jax
import jax.numpy as jnp
from jax.experimental import pallas as pl
from jax.experimental.pallas import tpu as pltpu


def _round_up(x, m):
    return ((x + m - 1) // m) * m


def step_network_kernel(nbr_ref, gum_ref, feat_ref, w_ref, out_ref, *,
                        n_labels, c_dim):
    nbr = nbr_ref[...]            # (BB, N)  0/1 neighbor indicator, one walk per row
    gum = gum_ref[...]            # (BB, L)  Gumbel noise per walk
    feat_t = feat_ref[...]        # (L,  N)  node features, transposed (lane-major in N)
    w = w_ref[...]                # (RW, OUT_W)  [W2 rows | bias row | attention row]

    BB = nbr.shape[0]
    L = n_labels
    OUT_W = out_ref.shape[1]

    attn = w[L + 1:L + 2, :L]     # (1, L)  attention row packed into the weight slab

    # sample_node_label: neighbor_features = neighbor_vector @ features,
    # batched over BB walks.  M=BB is far below MXU width, so this stays on the
    # VPU (broadcast multiply) + a full-width lane reduce over the N nodes.
    nf = jnp.sum(nbr[:, None, :] * feat_t[None, :, :], axis=2)          # (BB, L)
    spread = attn * nf                                                  # (BB, L)

    # np.random.choice(p=spread/sum(spread)) == Gumbel-max; argmax is invariant
    # to the /sum normalization so it is skipped.  Guarded log: non-positive
    # entries -> -inf (not NaN); an all-non-positive row picks label 0
    # deterministically (np.random.choice would raise on such a p vector).
    logits = jnp.where(spread > 0.0, jnp.log(spread), -jnp.inf) + gum   # (BB, L)
    lane_l = jax.lax.broadcasted_iota(jnp.int32, (BB, L), 1)
    m = jnp.max(logits, axis=1, keepdims=True)                          # (BB, 1)
    # lowest-index deterministic tie-break (measure-zero with continuous noise)
    label = jnp.min(jnp.where(logits == m, lane_l, L),
                    axis=1, keepdims=True)                              # (BB, 1) int32

    # make_step: attention score of the chosen label.
    one_hot = (lane_l == label).astype(jnp.float32)                     # (BB, L)
    score = jnp.sum(attn * one_hot, axis=1, keepdims=True)              # (BB, 1)

    # forward, theta products pre-folded on the host:
    #   state = (attn @ th1 @ th3[:D]) + (th2 @ th3[D:])[label, :]
    #         =  bias (w row L)        +  W2[label, :]  (w rows [0, L))
    # Selected with a short static unroll over the L node types: exact f32,
    # all 2-D, no MXU, no gather.
    state = jnp.broadcast_to(w[L:L + 1, :], (BB, OUT_W))                # bias
    for l in range(L):
        state = state + (label == l).astype(jnp.float32) * w[l:l + 1, :]

    # single lane-dense output slab per walk: [ state | score | label | zeros ]
    # (lanes >= c_dim of `state` are zero because the weights are zero-padded)
    lane_o = jax.lax.broadcasted_iota(jnp.int32, (BB, OUT_W), 1)
    out = jnp.where(lane_o == c_dim, score, state)
    out = jnp.where(lane_o == c_dim + 1, label.astype(jnp.float32), out)
    out_ref[...] = out


def prepare_step_network_params(attention, theta1, theta2, theta3, features):
    """One-time fold of everything static across sampling steps."""
    L, D = theta1.shape
    C = theta3.shape[1]
    N = features.shape[0]
    OUT_W = _round_up(C + 2, 128)
    RW = _round_up(L + 2, 8)

    attention = jnp.asarray(attention, jnp.float32).reshape(1, L)
    # cat([attn @ th1, one_hot @ th2]) @ th3
    #   == one_hot @ (th2 @ th3[D:])  +  (attn @ th1) @ th3[:D]
    W2 = jnp.asarray(theta2, jnp.float32) @ jnp.asarray(theta3, jnp.float32)[D:, :]
    bias = (attention @ jnp.asarray(theta1, jnp.float32)) @ jnp.asarray(theta3, jnp.float32)[:D, :]

    # One lane-dense weight slab (single input DMA):
    #   rows [0, L) : W2 (zero-padded to OUT_W lanes)
    #   row   L     : folded bias
    #   row   L+1   : attention (first L lanes)
    w_slab = jnp.zeros((RW, OUT_W), jnp.float32)
    w_slab = w_slab.at[:L, :C].set(W2)
    w_slab = w_slab.at[L, :C].set(bias[0])
    w_slab = w_slab.at[L + 1, :L].set(attention[0])

    # Features stored transposed (L, N): lane-major over graph nodes so the
    # in-kernel neighbor reduction is a full-width lane reduce.
    feat_t = jnp.asarray(features, jnp.float32).T                       # (L, N)

    return dict(feat_t=feat_t, w_slab=w_slab,
                n_nodes=N, n_labels=L, c_dim=C, out_w=OUT_W)


def step_network_layer(params, neighbor_vec, gumbel, *, block_b=8):
    """One batched sampling step: B independent walks per pallas_call."""
    feat_t, w_slab = params["feat_t"], params["w_slab"]
    N, L, C = params["n_nodes"], params["n_labels"], params["c_dim"]
    OUT_W = params["out_w"]
    RW = w_slab.shape[0]
    B = neighbor_vec.shape[0]
    assert neighbor_vec.shape == (B, N) and gumbel.shape == (B, L)
    assert B % block_b == 0

    kernel = functools.partial(step_network_kernel, n_labels=L, c_dim=C)
    return pl.pallas_call(
        kernel,
        out_shape=jax.ShapeDtypeStruct((B, OUT_W), jnp.float32),
        grid_spec=pltpu.PrefetchScalarGridSpec(
            num_scalar_prefetch=0,
            grid=(B // block_b,),
            in_specs=[
                pl.BlockSpec((block_b, N), lambda i: (i, 0)),   # per-walk neighbor masks
                pl.BlockSpec((block_b, L), lambda i: (i, 0)),   # per-walk Gumbel noise
                pl.BlockSpec((L, N), lambda i: (0, 0)),         # static: features^T (fetched once)
                pl.BlockSpec((RW, OUT_W), lambda i: (0, 0)),    # static: weight slab (fetched once)
            ],
            out_specs=pl.BlockSpec((block_b, OUT_W), lambda i: (i, 0)),
        ),
        # shard batch blocks across both TensorCores on v7x; harmless on 1-TC chips
        compiler_params=pltpu.CompilerParams(
            dimension_semantics=("parallel",)),
    )(neighbor_vec, gumbel, feat_t, w_slab)


def unpack_step_outputs(params, packed):
    """Split the packed (B, OUT_W) slab into (state, label, attention_score)."""
    C = params["c_dim"]
    B = packed.shape[0]
    state = packed[:, :C].reshape(B, 1, 1, C)       # per-walk state.view(1, 1, C)
    score = packed[:, C]
    label = packed[:, C + 1].astype(jnp.int32)      # exact round-trip for L < 2**24
    return state, label, score


if __name__ == "__main__":
    # Shapes consistent with the module: len(identifiers)=L=8, step_dimensions=D=32,
    # combined_dimensions=C=32, graph with N=16 nodes; B=16 independent walks
    # batched per kernel call (2 sublane-full blocks -> both v7x TensorCores).
    N, L, D, C, B = 16, 8, 32, 32, 16
    key = jax.random.PRNGKey(0)
    k_feat, k_nbr, k_t1, k_t2, k_t3, k_gum = jax.random.split(key, 6)

    features = jax.random.uniform(k_feat, (N, L), dtype=jnp.float32)        # positive features
    neighbor_vec = jax.random.bernoulli(k_nbr, 0.5, (B, N)).astype(jnp.float32)
    neighbor_vec = neighbor_vec.at[:, 0].set(1.0)                           # >=1 neighbor per walk
    attention = jnp.ones((L,), jnp.float32) / L                             # setup_attention()

    # torch.nn.init.uniform_(theta, -1, 1), deterministic in-script
    theta1 = jax.random.uniform(k_t1, (L, D), minval=-1.0, maxval=1.0, dtype=jnp.float32)
    theta2 = jax.random.uniform(k_t2, (L, D), minval=-1.0, maxval=1.0, dtype=jnp.float32)
    theta3 = jax.random.uniform(k_t3, (2 * D, C), minval=-1.0, maxval=1.0, dtype=jnp.float32)

    # Gumbel noise -> categorical label sample (replaces np.random.choice)
    u = jax.random.uniform(k_gum, (B, L), minval=1e-6, maxval=1.0, dtype=jnp.float32)
    gumbel = -jnp.log(-jnp.log(u))

    params = prepare_step_network_params(attention, theta1, theta2, theta3, features)
    packed = step_network_layer(params, neighbor_vec, gumbel)
    jax.block_until_ready(packed)
    state, label, score = unpack_step_outputs(params, packed)

    # Plain-JAX reference for a sanity check of the in-kernel math.
    nf = neighbor_vec @ features                                   # (B, L)
    spread = attention.reshape(1, L) * nf
    label_ref = jnp.argmax(jnp.log(spread) + gumbel, axis=1)       # Gumbel-max sample
    one_hot = jax.nn.one_hot(label_ref, L, dtype=jnp.float32)
    ha = jnp.broadcast_to(attention.reshape(1, L) @ theta1, (B, D))
    hn = one_hot @ theta2
    state_ref = jnp.concatenate([ha, hn], axis=1) @ theta3         # (B, C)
    score_ref = attention[label_ref]

    assert jnp.array_equal(label, label_ref.astype(jnp.int32))
    assert jnp.allclose(state.reshape(B, C), state_ref, atol=2e-4, rtol=2e-4)
    assert jnp.allclose(score, score_ref, atol=1e-6)
    print("KERNEL_OK")
</pallas_src>

<mosaic_0001>
module attributes {stable_mosaic.version = 11 : i64} {
  func.func @step_network_kernel(%arg0: i32, %arg1: memref<8x16xf32, #tpu.memory_space<vmem>>, %arg2: memref<8x8xf32, #tpu.memory_space<vmem>>, %arg3: memref<8x16xf32, #tpu.memory_space<vmem>>, %arg4: memref<16x128xf32, #tpu.memory_space<vmem>>, %arg5: memref<8x128xf32, #tpu.memory_space<vmem>>) attributes {dimension_semantics = [#tpu.dimension_semantics<parallel>], iteration_bounds = array<i64: 2>, scalar_prefetch = 0 : i64, scratch_operands = 0 : i64, tpu.core_type = #tpu.core_type<tc>, window_params = [{transform_indices = @transform_0, window_bounds = array<i64: 8, 16>}, {transform_indices = @transform_1, window_bounds = array<i64: 8, 8>}, {pipeline_mode = #tpu.pipeline_mode<synchronous>, transform_indices = @transform_2, window_bounds = array<i64: 8, 16>}, {pipeline_mode = #tpu.pipeline_mode<synchronous>, transform_indices = @transform_3, window_bounds = array<i64: 16, 128>}, {transform_indices = @transform_4, window_bounds = array<i64: 8, 128>}]} {
    %c0 = arith.constant 0 : index
    %c0_0 = arith.constant 0 : index
    %0 = vector.load %arg1[%c0, %c0_0] : memref<8x16xf32, #tpu.memory_space<vmem>>, vector<8x16xf32>
    %c0_1 = arith.constant 0 : index
    %c0_2 = arith.constant 0 : index
    %1 = vector.load %arg2[%c0_1, %c0_2] : memref<8x8xf32, #tpu.memory_space<vmem>>, vector<8x8xf32>
    %c0_3 = arith.constant 0 : index
    %c0_4 = arith.constant 0 : index
    %2 = vector.load %arg3[%c0_3, %c0_4] : memref<8x16xf32, #tpu.memory_space<vmem>>, vector<8x16xf32>
    %c0_5 = arith.constant 0 : index
    %c0_6 = arith.constant 0 : index
    %3 = vector.load %arg4[%c0_5, %c0_6] : memref<16x128xf32, #tpu.memory_space<vmem>>, vector<16x128xf32>
    %4 = vector.extract_strided_slice %3 {offsets = [9, 0], sizes = [1, 8], strides = [1, 1]} : vector<16x128xf32> to vector<1x8xf32>
    %5 = vector.shape_cast %0 : vector<8x16xf32> to vector<8x1x16xf32>
    %6 = vector.shape_cast %2 : vector<8x16xf32> to vector<1x8x16xf32>
    %7 = vector.broadcast %5 : vector<8x1x16xf32> to vector<8x8x16xf32>
    %8 = vector.broadcast %6 : vector<1x8x16xf32> to vector<8x8x16xf32>
    %9 = arith.mulf %7, %8 : vector<8x8x16xf32>
    %cst = arith.constant dense<0.000000e+00> : vector<8x8xf32>
    %10 = vector.multi_reduction <add>, %9, %cst [2] : vector<8x8x16xf32> to vector<8x8xf32>
    %11 = vector.broadcast %4 : vector<1x8xf32> to vector<8x8xf32>
    %12 = arith.mulf %11, %10 : vector<8x8xf32>
    %cst_7 = arith.constant 0.000000e+00 : f32
    %13 = vector.broadcast %cst_7 : f32 to vector<8x8xf32>
    %14 = arith.cmpf ogt, %12, %13 : vector<8x8xf32>
    %15 = math.log %12 : vector<8x8xf32>
    %cst_8 = arith.constant 0xFF800000 : f32
    %16 = vector.broadcast %cst_8 : f32 to vector<8x8xf32>
    %17 = arith.select %14, %15, %16 : vector<8x8xi1>, vector<8x8xf32>
    %18 = arith.addf %17, %1 : vector<8x8xf32>
    %19 = tpu.iota {dimensions = array<i32: 1>} : vector<8x8xi32>
    %cst_9 = arith.constant dense<0xFF800000> : vector<8xf32>
    %20 = vector.multi_reduction <maximumf>, %18, %cst_9 [1] : vector<8x8xf32> to vector<8xf32>
    %21 = vector.shape_cast %20 : vector<8xf32> to vector<8x1xf32>
    %22 = vector.broadcast %21 : vector<8x1xf32> to vector<8x8xf32>
    %23 = arith.cmpf oeq, %18, %22 : vector<8x8xf32>
    %c8_i32 = arith.constant 8 : i32
    %24 = vector.broadcast %c8_i32 : i32 to vector<8x8xi32>
    %25 = arith.select %23, %19, %24 : vector<8x8xi1>, vector<8x8xi32>
    %cst_10 = arith.constant dense<2147483647> : vector<8xi32>
    %26 = vector.multi_reduction <minsi>, %25, %cst_10 [1] : vector<8x8xi32> to vector<8xi32>
    %27 = vector.shape_cast %26 : vector<8xi32> to vector<8x1xi32>
    %28 = vector.broadcast %27 : vector<8x1xi32> to vector<8x8xi32>
    %29 = arith.cmpi eq, %19, %28 : vector<8x8xi32>
    %30 = arith.extui %29 : vector<8x8xi1> to vector<8x8xi32>
    %31 = arith.sitofp %30 : vector<8x8xi32> to vector<8x8xf32>
    %32 = vector.broadcast %4 : vector<1x8xf32> to vector<8x8xf32>
    %33 = arith.mulf %32, %31 : vector<8x8xf32>
    %cst_11 = arith.constant dense<0.000000e+00> : vector<8xf32>
    %34 = vector.multi_reduction <add>, %33, %cst_11 [1] : vector<8x8xf32> to vector<8xf32>
    %35 = vector.shape_cast %34 : vector<8xf32> to vector<8x1xf32>
    %36 = vector.extract_strided_slice %3 {offsets = [8, 0], sizes = [1, 128], strides = [1, 1]} : vector<16x128xf32> to vector<1x128xf32>
    %37 = vector.shape_cast %36 : vector<1x128xf32> to vector<1x128xf32>
    %38 = vector.broadcast %37 : vector<1x128xf32> to vector<8x128xf32>
    %c0_i32 = arith.constant 0 : i32
    %39 = vector.broadcast %c0_i32 : i32 to vector<8x1xi32>
    %40 = arith.cmpi eq, %27, %39 : vector<8x1xi32>
    %41 = arith.extui %40 : vector<8x1xi1> to vector<8x1xi32>
    %42 = arith.sitofp %41 : vector<8x1xi32> to vector<8x1xf32>
    %43 = vector.extract_strided_slice %3 {offsets = [0, 0], sizes = [1, 128], strides = [1, 1]} : vector<16x128xf32> to vector<1x128xf32>
    %44 = vector.broadcast %42 : vector<8x1xf32> to vector<8x128xf32>
    %45 = vector.broadcast %43 : vector<1x128xf32> to vector<8x128xf32>
    %46 = arith.mulf %44, %45 : vector<8x128xf32>
    %47 = arith.addf %38, %46 : vector<8x128xf32>
    %c1_i32 = arith.constant 1 : i32
    %48 = vector.broadcast %c1_i32 : i32 to vector<8x1xi32>
    %49 = arith.cmpi eq, %27, %48 : vector<8x1xi32>
    %50 = arith.extui %49 : vector<8x1xi1> to vector<8x1xi32>
    %51 = arith.sitofp %50 : vector<8x1xi32> to vector<8x1xf32>
    %52 = vector.extract_strided_slice %3 {offsets = [1, 0], sizes = [1, 128], strides = [1, 1]} : vector<16x128xf32> to vector<1x128xf32>
    %53 = vector.broadcast %51 : vector<8x1xf32> to vector<8x128xf32>
    %54 = vector.broadcast %52 : vector<1x128xf32> to vector<8x128xf32>
    %55 = arith.mulf %53, %54 : vector<8x128xf32>
    %56 = arith.addf %47, %55 : vector<8x128xf32>
    %c2_i32 = arith.constant 2 : i32
    %57 = vector.broadcast %c2_i32 : i32 to vector<8x1xi32>
    %58 = arith.cmpi eq, %27, %57 : vector<8x1xi32>
    %59 = arith.extui %58 : vector<8x1xi1> to vector<8x1xi32>
    %60 = arith.sitofp %59 : vector<8x1xi32> to vector<8x1xf32>
    %61 = vector.extract_strided_slice %3 {offsets = [2, 0], sizes = [1, 128], strides = [1, 1]} : vector<16x128xf32> to vector<1x128xf32>
    %62 = vector.broadcast %60 : vector<8x1xf32> to vector<8x128xf32>
    %63 = vector.broadcast %61 : vector<1x128xf32> to vector<8x128xf32>
    %64 = arith.mulf %62, %63 : vector<8x128xf32>
    %65 = arith.addf %56, %64 : vector<8x128xf32>
    %c3_i32 = arith.constant 3 : i32
    %66 = vector.broadcast %c3_i32 : i32 to vector<8x1xi32>
    %67 = arith.cmpi eq, %27, %66 : vector<8x1xi32>
    %68 = arith.extui %67 : vector<8x1xi1> to vector<8x1xi32>
    %69 = arith.sitofp %68 : vector<8x1xi32> to vector<8x1xf32>
    %70 = vector.extract_strided_slice %3 {offsets = [3, 0], sizes = [1, 128], strides = [1, 1]} : vector<16x128xf32> to vector<1x128xf32>
    %71 = vector.broadcast %69 : vector<8x1xf32> to vector<8x128xf32>
    %72 = vector.broadcast %70 : vector<1x128xf32> to vector<8x128xf32>
    %73 = arith.mulf %71, %72 : vector<8x128xf32>
    %74 = arith.addf %65, %73 : vector<8x128xf32>
    %c4_i32 = arith.constant 4 : i32
    %75 = vector.broadcast %c4_i32 : i32 to vector<8x1xi32>
    %76 = arith.cmpi eq, %27, %75 : vector<8x1xi32>
    %77 = arith.extui %76 : vector<8x1xi1> to vector<8x1xi32>
    %78 = arith.sitofp %77 : vector<8x1xi32> to vector<8x1xf32>
    %79 = vector.extract_strided_slice %3 {offsets = [4, 0], sizes = [1, 128], strides = [1, 1]} : vector<16x128xf32> to vector<1x128xf32>
    %80 = vector.broadcast %78 : vector<8x1xf32> to vector<8x128xf32>
    %81 = vector.broadcast %79 : vector<1x128xf32> to vector<8x128xf32>
    %82 = arith.mulf %80, %81 : vector<8x128xf32>
    %83 = arith.addf %74, %82 : vector<8x128xf32>
    %c5_i32 = arith.constant 5 : i32
    %84 = vector.broadcast %c5_i32 : i32 to vector<8x1xi32>
    %85 = arith.cmpi eq, %27, %84 : vector<8x1xi32>
    %86 = arith.extui %85 : vector<8x1xi1> to vector<8x1xi32>
    %87 = arith.sitofp %86 : vector<8x1xi32> to vector<8x1xf32>
    %88 = vector.extract_strided_slice %3 {offsets = [5, 0], sizes = [1, 128], strides = [1, 1]} : vector<16x128xf32> to vector<1x128xf32>
    %89 = vector.broadcast %87 : vector<8x1xf32> to vector<8x128xf32>
    %90 = vector.broadcast %88 : vector<1x128xf32> to vector<8x128xf32>
    %91 = arith.mulf %89, %90 : vector<8x128xf32>
    %92 = arith.addf %83, %91 : vector<8x128xf32>
    %c6_i32 = arith.constant 6 : i32
    %93 = vector.broadcast %c6_i32 : i32 to vector<8x1xi32>
    %94 = arith.cmpi eq, %27, %93 : vector<8x1xi32>
    %95 = arith.extui %94 : vector<8x1xi1> to vector<8x1xi32>
    %96 = arith.sitofp %95 : vector<8x1xi32> to vector<8x1xf32>
    %97 = vector.extract_strided_slice %3 {offsets = [6, 0], sizes = [1, 128], strides = [1, 1]} : vector<16x128xf32> to vector<1x128xf32>
    %98 = vector.broadcast %96 : vector<8x1xf32> to vector<8x128xf32>
    %99 = vector.broadcast %97 : vector<1x128xf32> to vector<8x128xf32>
    %100 = arith.mulf %98, %99 : vector<8x128xf32>
    %101 = arith.addf %92, %100 : vector<8x128xf32>
    %c7_i32 = arith.constant 7 : i32
    %102 = vector.broadcast %c7_i32 : i32 to vector<8x1xi32>
    %103 = arith.cmpi eq, %27, %102 : vector<8x1xi32>
    %104 = arith.extui %103 : vector<8x1xi1> to vector<8x1xi32>
    %105 = arith.sitofp %104 : vector<8x1xi32> to vector<8x1xf32>
    %106 = vector.extract_strided_slice %3 {offsets = [7, 0], sizes = [1, 128], strides = [1, 1]} : vector<16x128xf32> to vector<1x128xf32>
    %107 = vector.broadcast %105 : vector<8x1xf32> to vector<8x128xf32>
    %108 = vector.broadcast %106 : vector<1x128xf32> to vector<8x128xf32>
    %109 = arith.mulf %107, %108 : vector<8x128xf32>
    %110 = arith.addf %101, %109 : vector<8x128xf32>
    %111 = tpu.iota {dimensions = array<i32: 1>} : vector<8x128xi32>
    %c32_i32 = arith.constant 32 : i32
    %112 = vector.broadcast %c32_i32 : i32 to vector<8x128xi32>
    %113 = arith.cmpi eq, %111, %112 : vector<8x128xi32>
    %114 = vector.shape_cast %35 : vector<8x1xf32> to vector<8x1xf32>
    %115 = vector.broadcast %114 : vector<8x1xf32> to vector<8x128xf32>
    %116 = arith.select %113, %115, %110 : vector<8x128xi1>, vector<8x128xf32>
    %c33_i32 = arith.constant 33 : i32
    %117 = vector.broadcast %c33_i32 : i32 to vector<8x128xi32>
    %118 = arith.cmpi eq, %111, %117 : vector<8x128xi32>
    %119 = arith.sitofp %27 : vector<8x1xi32> to vector<8x1xf32>
    %120 = vector.shape_cast %119 : vector<8x1xf32> to vector<8x1xf32>
    %121 = vector.broadcast %120 : vector<8x1xf32> to vector<8x128xf32>
    %122 = arith.select %118, %121, %116 : vector<8x128xi1>, vector<8x128xf32>
    %c0_12 = arith.constant 0 : index
    %c0_13 = arith.constant 0 : index
    %123 = vector.load %arg5[%c0_12, %c0_13] : memref<8x128xf32, #tpu.memory_space<vmem>>, vector<8x128xf32>
    tpu.vector_store %arg5[%c0_12, %c0_13], %122 {strides = array<i32>} : memref<8x128xf32, #tpu.memory_space<vmem>>, vector<8x128xf32>,
    return
  }
  func.func @transform_0(%arg0: i32) -> (i32, i32) {
    %c0_i32 = arith.constant 0 : i32
    %c0_i32_0 = arith.constant 0 : i32
    return %arg0, %c0_i32 : i32, i32
  }
  func.func @transform_1(%arg0: i32) -> (i32, i32) {
    %c0_i32 = arith.constant 0 : i32
    %c0_i32_0 = arith.constant 0 : i32
    return %arg0, %c0_i32 : i32, i32
  }
  func.func @transform_2(%arg0: i32) -> (i32, i32) {
    %c0_i32 = arith.constant 0 : i32
    %c0_i32_0 = arith.constant 0 : i32
    %c0_i32_1 = arith.constant 0 : i32
    return %c0_i32, %c0_i32_0 : i32, i32
  }
  func.func @transform_3(%arg0: i32) -> (i32, i32) {
    %c0_i32 = arith.constant 0 : i32
    %c0_i32_0 = arith.constant 0 : i32
    %c0_i32_1 = arith.constant 0 : i32
    return %c0_i32, %c0_i32_0 : i32, i32
  }
  func.func @transform_4(%arg0: i32) -> (i32, i32) {
    %c0_i32 = arith.constant 0 : i32
    %c0_i32_0 = arith.constant 0 : i32
    return %arg0, %c0_i32 : i32, i32
  }
}

</mosaic_0001>

<bundles_post_ra>
// kernel: tpu_custom_call.1
= control target key start
LH: loop header
LB: loop body
LE: loop exit
PB: predicated region body
PF: predicated region fallthrough
CT: control target
= control target key end

     0   :  { %9 = vsyncpa [#allocation3], 0  ;;  %s1011_s0 = inlined_call_operand.vmem [shape: f32[16,16], index: 0, kind: input, shape index: {}]   ;;  %s1012_s1 = inlined_call_operand.vmem [shape: f32[16,8], index: 1, kind: input, shape index: {}]   ;;  %s1013_s2 = inlined_call_operand.vmem [shape: f32[8,16], index: 2, kind: input, shape index: {}]   ;;  %s1014_s3 = inlined_call_operand.hbm [shape: f32[16,128], index: 3, kind: input, shape index: {}]   ;;  %s1015_s4 = inlined_call_operand.hbm [shape: f32[16,128], index: 4, kind: output, shape index: {}]  }
   0x1   :  { %10 = vsyncpa [#allocation4], 0 }
   0x2   :  { %12 = vsyncpa [#allocation4 + $0x1], 0  ;;  %s829_s15 = smov 0   ;;  %s831_s16 = smov 0  }
   0x3   :  { %s833_s17 = smov 0   ;;  %s835_s18 = smov 0  }
   0x4 LB: > { %s850_s19 = sadd.s32 4294967295, %s796_s18   ;;  %s627_s20 = sadd.s32 4294967294, %s796_s18   ;;  %s796_s18 = sphi %s835_s18, %s1023_s18   ;;  %s792_s17 = sphi %s833_s17, %s1022_s17   ;;  %s788_s16 = sphi %s831_s16, %s1021_s16   ;;  %s784_s15 = sphi %s829_s15, %s1020_s15  }
   0x5   : > { %s854_s21 = sadd.s32 1, %s796_s18   ;;  %s119_s22 = sadd.s32 1, %s792_s17 }
   0x6   : > { %s116_s23 = ssub.s32 %s796_s18, %s854_s21  ;;  %p129_p0 = scmp.ne.s32.totalorder %s792_s17, %s788_s16 }
   0x7   : > { %p117_p1 = scmp.eq.s32.totalorder %s116_s23, 0  ;;  %p130_p2 = scmp.eq.s32.totalorder %s850_s19, 1 }
   0x8   : > { %p135_p3 = scmp.ne.s32.totalorder %s788_s16, %s784_s15  ;;  %p136_p4 = scmp.eq.s32.totalorder %s627_s20, 1 }
   0x9   : > { %s865_s24 = scalar_select %p117_p1, %s792_s17, %s119_s22  }
   0xa   : > { %p867_p5 = por %p130_p2, %p129_p0  ;;  %p871_p6 = por %p136_p4, %p135_p3 }
   0xb   : > { %p628_p7 = scmp.ge.s32.totalorder %s796_s18, 1  ;;  %p143_p8 = scmp.lt.s32.totalorder %s796_s18, 3 }
   0xc   : > { %s1017_s26 = scalar_select %p871_p6, 1, 0 }
   0xd   : > { %p663_p9 = scmp.eq.s32.totalorder %s850_s19, 0  ;;  %p878_p10 = pnand %p628_p7, %p143_p8 }
   0xe   : > { %s798_s28 = smov [#allocation2]  }
   0xf   : > { %s158_s29 = sshll.u32 %s798_s28, 4  ;;  %p655_p11 = pneg %p878_p10  ;;  %s159_s29 = int_to_ptr.vmem [resolvable:$true] %s158_s29 }
  0x10   : > { %s717_s30 = scalar_lea.vmem %s159_s29, 256  ;;  %p725_p3 = scmp.lt.s32.totalorder %s159_s29, %s159_s29 }
  0x11   : > { %p656_p12 = pnand %p663_p9, %p655_p11  ;;  %p718_p0 = scmp.ne.s32.totalorder %s159_s29, %s717_s30 }
  0x12   : > { %p726_p4 = scmp.lt.s32.totalorder %s717_s30, %s717_s30 }
  0x13   : > { %p708_p13 = pneg %p656_p12 }
  0x14   : > { %p727_p6 = por %p726_p4, %p725_p3 }
  0x15   : > { %p720_p1 = pnand %p718_p0, %p708_p13 }
  0x17   : > { %p721_p2 = pneg %p720_p1 }
  0x19   : > { %p728_p7 = pnand %p727_p6, %p721_p2 }
  0x1b   : > { %731 = shalt.err (!%p728_p7)
}
  0x1c   : > { %s799_s5 = smov 128   ;;  %s800_s6 = smov 8  }
  0x1d   : > { %658 = dma.hbm_to_vmem [thread:$0]  (!%p656_p12), %s1014_s3, 256, %s159_s29, [#allocation3], %s799_s5, %s799_s5, %s800_s6  }
  0x1e   : > { %188 = sbr.rel (%p878_p10) target bundleno = 814 (0x32e), region = 36 }
  0x23   : > { %775 = dma.done.wait (%p663_p9), [#allocation3], 256  }
  0x24   : > { %777 = vsyncadd (%p663_p9), [#allocation3], 4294967040  ;;  %p217_p8 = scmp.lt.s32.totalorder %s850_s19, 1  ;;  %v235_v0 = vlaneseq  ;;  %v801_v1 = vmov 1966171168   ;;  %v227_v13 = vld [vmem:[%s1013_s2] sm:$0xff] }
  0x25   : > { %v233_v2 = vunpack.c.l.s4 %v801_v1  ;;  %vm328_vm0 = vcmask 130048   ;;  %vm399_vm1 = vcmask 1041409   ;;  %vm401_vm2 = vcmask 1042434   ;;  %v935_v1 = vld [vmem:[#allocation2 + $0x8] sm:$0xff]  ;;  %s214_s28 = sand.u32 1, %s788_s16   ;;  %s646_s30 = sshll.u32 %s850_s19, 7 }
  0x26   : > { %s897_s9 = scalar_select %p217_p8, %s850_s19, 1  ;;  %v899_v3 = vshrl.u32 %v235_v0, 7  ;;  %v930_v46 = vand.u32 127, %v235_v0  ;;  %vm403_vm3 = vcmask 1043459   ;;  %vm405_vm4 = vcmask 1044484  }
  0x27   : > { %v234_v4 = vunpack.c.0.s8 %v233_v2  ;;  %vm407_vm5 = vcmask 1045509   ;;  %vm409_vm6 = vcmask 1046534   ;;  %vm411_vm7 = vcmask 1047559   ;;  %s633_s29 = sshll.u32 %s214_s28, 3  ;;  %s803_s19 = smov [#allocation5]  }
  0x28   : > { %s634_s10 = sshll.u32 %s897_s9, 3  ;;  %v909_v8 = vsub.s32 0, %v899_v3  ;;  %v369_v48 = vsub.s32 %v930_v46, %v899_v3  ;;  %v355_v62 = vsub.s32 1, %v899_v3  ;;  %vm420_vm9 = vcmask 64512   ;;  %s216_s5 = scalar_lea.vmem [#allocation5], %s633_s29 }
  0x29   : > { %s220_s13 = scalar_lea.vmem %s1011_s0, %s634_s10  ;;  %v237_v5 = vsub.s32 %v234_v4, %v899_v3  ;;  %s224_s27 = scalar_lea.vmem %s1012_s1, %s634_s10 }
  0x2a   : > { %v225_v6 = vld [vmem:[%s220_s13] sm:$0xff]  ;;  %s544_s6 = sshll.u32 %s216_s5, 4  ;;  %s976_s9 = scalar_lea.hbm %s1015_s4, %s646_s30  ;;  %s545_s6 = int_to_ptr.vmem [resolvable:$true] %s544_s6 }
  0x2b   : > { %v238_v7 = vrot.slane %v225_v6, %v237_v5  ;;  %v231_v9 = vcombine.high %v225_v6, %v225_v6  ;;  %v356_v6 = vrot.slane %v935_v1, %v355_v62  ;;  %s531_s10 = scalar_lea.sflag [#allocation4], %s214_s28  ;;  %s732_s11 = scalar_lea.vmem %s545_s6, 128 }
  0x2c   : > { %p733_p6 = scmp.ne.s32.totalorder %s545_s6, %s732_s11  ;;  %s736_s12 = sshll.u32 %s803_s19, 4  ;;  %s737_s12 = int_to_ptr.vmem [resolvable:$false] %s736_s12 }
  0x2d   : > { %v254_v10 = vrot.slane %v238_v7, %v237_v5  ;;  %v246_v11 = vcombine.high %v238_v7, %v238_v7  ;;  %v245_v12 = vrot.slane %v231_v9, %v237_v5  ;;  %s738_s13 = scalar_lea.vmem %s737_s12, 256  ;;  %p739_p11 = scmp.lt.s32.totalorder %s545_s6, %s737_s12 }
  0x2e   : > { %p734_p9 = pnand %p733_p6, %p867_p5  ;;  %p740_p12 = scmp.lt.s32.totalorder %s738_s13, %s732_s11 }
  0x2f   : > { %v283_v14 = vrot.slane %v254_v10, %v909_v8  ;;  %v276_v15 = vcombine.high %v254_v10, %v254_v10  ;;  %v268_v16 = vrot.slane %v246_v11, %v237_v5  ;;  %v261_v17 = vrot.slane %v245_v12, %v237_v5 }
  0x30   : > { %v247_v18 = vcombine.high %v245_v12, %v245_v12  ;;  %p735_p10 = pneg %p734_p9  ;;  %p741_p13 = por %p740_p12, %p739_p11 }
  0x31   : > { %v320_v19 = vmul.f32 %v283_v14, %v227_v13  ;;  %v291_v20 = vrot.slane %v276_v15, %v909_v8  ;;  %v287_v21 = vrot.slane %v268_v16, %v909_v8  ;;  %v278_v22 = vcombine.high %v268_v16, %v268_v16  ;;  %v226_v14 = vld [vmem:[%s224_s27] sm:$0xff] }
  0x32   : > { %v299_v23 = vrot.slane %v261_v17, %v909_v8  ;;  %v275_v24 = vrot.slane %v247_v18, %v237_v5  ;;  %v277_v25 = vcombine.high %v261_v17, %v261_v17  ;;  %p742_p0 = pnand %p741_p13, %p735_p10 }
  0x33   : > { %v329_v26 = vsel %vm328_vm0, %v320_v19, 0.0  ;;  %v322_v27 = vmul.f32 %v291_v20, %v227_v13  ;;  %v321_v28 = vmul.f32 %v287_v21, %v227_v13  ;;  %v295_v29 = vrot.slane %v278_v22, %v909_v8 }
  0x34   : > { %330 = vadd.xlane.f32.xlu0 %v329_v26  ;;  %v324_v30 = vmul.f32 %v299_v23, %v227_v13  ;;  %v303_v31 = vrot.slane %v275_v24, %v909_v8  ;;  %v279_v32 = vcombine.high %v275_v24, %v275_v24  ;;  %v307_v36 = vrot.slane %v277_v25, %v909_v8 }
  0x35   : > { %v335_v33 = vsel %vm328_vm0, %v322_v27, 0.0  ;;  %v332_v34 = vsel %vm328_vm0, %v321_v28, 0.0  ;;  %v323_v35 = vmul.f32 %v295_v29, %v227_v13  ;;  %v228_v29 = vld [vmem:[#allocation2] sm:$0xff] }
  0x36   : > { %336 = vadd.xlane.f32.xlu1 %v335_v33  ;;  %v325_v38 = vmul.f32 %v303_v31, %v227_v13  ;;  %v311_v39 = vrot.slane %v279_v32, %v909_v8  ;;  %v341_v40 = vsel %vm328_vm0, %v324_v30, 0.0  ;;  %v326_v41 = vmul.f32 %v307_v36, %v227_v13 }
  0x37   : > { %v338_v37 = vsel %vm328_vm0, %v323_v35, 0.0  ;;  %v475_v31 = vsub.s32 2, %v899_v3  ;;  %v458_v36 = vrot.slane %v228_v29, %v909_v8 }
  0x38   : > { %333 = vadd.xlane.f32.xlu0 %v332_v34  ;;  %v344_v42 = vsel %vm328_vm0, %v325_v38, 0.0  ;;  %v327_v43 = vmul.f32 %v311_v39, %v227_v13  ;;  %v347_v44 = vsel %vm328_vm0, %v326_v41, 0.0  ;;  %v467_v34 = vrot.slane %v228_v29, %v355_v62 }
  0x39   : > { %v451_v38 = vrot.slane %v935_v1, %v909_v8  ;;  %v476_v39 = vrot.slane %v228_v29, %v475_v31  ;;  %v502_v41 = vsub.s32 5, %v899_v3  ;;  %v520_v1 = vsub.s32 7, %v899_v3 }
  0x3a   : > { %339 = vadd.xlane.f32.xlu1 %v338_v37  ;;  %v350_v45 = vsel %vm328_vm0, %v327_v43, 0.0  ;;  %v484_v37 = vsub.s32 3, %v899_v3 }
  0x3c   : > { %342 = vadd.xlane.f32.xlu0 %v341_v40  ;;  %v493_v40 = vsub.s32 4, %v899_v3 }
  0x3e   : > { %345 = vadd.xlane.f32.xlu1 %v344_v42  ;;  %v802_v42 = vmov 0.0  }
  0x40   : > { %348 = vadd.xlane.f32.xlu0 %v347_v44 }
  0x42   : > { %351 = vadd.xlane.f32.xlu1 %v350_v45 }
  0xbd   : > { %v331_v47 = vpop.xlane.xlu0 %330 }
  0xbe   : > { %v370_v51 = vrot.slane %v331_v47, %v369_v48 }
  0xbf   : > { %v337_v49 = vpop.xlane.xlu1 %336 }
  0xc0   : > { %v378_v53 = vrot.slane %v337_v49, %v369_v48 }
  0xc1   : > { %v334_v50 = vpop.xlane.xlu0 %333 }
  0xc2   : > { %v374_v52 = vrot.slane %v334_v50, %v369_v48  ;;  %v485_v50 = vrot.slane %v228_v29, %v484_v37 }
  0xc3   : > { %v340_v54 = vpop.xlane.xlu1 %339 }
  0xc4   : > { %v400_v55 = vsel %vm399_vm1, %v374_v52, %v370_v51  ;;  %v382_v56 = vrot.slane %v340_v54, %v369_v48 }
  0xc5   : > { %v402_v57 = vsel %vm401_vm2, %v378_v53, %v400_v55  ;;  %v343_v58 = vpop.xlane.xlu0 %342 }
  0xc6   : > { %v404_v59 = vsel %vm403_vm3, %v382_v56, %v402_v57  ;;  %v386_v60 = vrot.slane %v343_v58, %v369_v48  ;;  %v511_v57 = vsub.s32 6, %v899_v3 }
  0xc7   : > { %v346_v61 = vpop.xlane.xlu1 %345 }
  0xc8   : > { %v406_v63 = vsel %vm405_vm4, %v386_v60, %v404_v59  ;;  %v390_v0 = vrot.slane %v346_v61, %v369_v48  ;;  %v494_v60 = vrot.slane %v228_v29, %v493_v40 }
  0xc9   : > { %v349_v2 = vpop.xlane.xlu0 %348 }
  0xca   : > { %v408_v4 = vsel %vm407_vm5, %v390_v0, %v406_v63  ;;  %v394_v5 = vrot.slane %v349_v2, %v369_v48  ;;  %v503_v0 = vrot.slane %v228_v29, %v502_v41  ;;  %vm524_vm5 = vcmp.eq.s32.totalorder %v930_v46, 32 }
  0xcb   : > { %v352_v7 = vpop.xlane.xlu1 %351 }
  0xcc   : > { %v410_v9 = vsel %vm409_vm6, %v394_v5, %v408_v4  ;;  %v398_v10 = vrot.slane %v352_v7, %v369_v48  ;;  %v512_v5 = vrot.slane %v228_v29, %v511_v57  ;;  %vm526_vm6 = vcmp.eq.s32.totalorder %v930_v46, 33 }
  0xce   : > { %v412_v11 = vsel %vm411_vm7, %v398_v10, %v410_v9  ;;  %v521_v9 = vrot.slane %v228_v29, %v520_v1 }
  0xcf   : > { %v414_v12 = vmul.f32 %v412_v11, %v356_v6 }
  0xd1   : > { %704 = vlog2.f32 %v414_v12  ;;  %vm415_vm8 = vcmp.gt.f32.partialorder %v414_v12, 0.0 }
  0xde   : > { %v705_v13 = vpop.eup %704 }
  0xdf   : > { %v417_v15 = vmul.f32 0.6931472, %v705_v13 }
  0xe1   : > { %v418_v16 = vsel %vm415_vm8, %v417_v15, -inf }
  0xe2   : > { %v419_v17 = vadd.f32 %v418_v16, %v226_v14 }
  0xe4   : > { %v421_v18 = vsel %vm420_vm9, %v419_v17, -inf }
  0xe5   : > { %422 = vmax.xlane.f32.xlu0 %v421_v18 }
 0x16e   : > { %v423_v19 = vpop.xlane.xlu0 %422 }
 0x16f   : > { %vm424_vm10 = vcmp.eq.f32.partialorder %v419_v17, %v423_v19 }
 0x170   : > { %v425_v20 = vsel %vm424_vm10, %v930_v46, 8 }
 0x171   : > { %v426_v21 = vsel %vm420_vm9, %v425_v20, 2147483647 }
 0x172   : > { %v428_v22 = vshra.s32 %v426_v21, 16  ;;  %v427_v24 = vand.u32 65535, %v426_v21 }
 0x174   : > { %v430_v23 = vcvt.s32.f32 %v428_v22  ;;  %v429_v26 = vcvt.s32.f32 %v427_v24 }
 0x176   : > { %431 = vmin.xlane.f32.xlu1 %v430_v23 }
 0x1ff   : > { %v432_v25 = vpop.xlane.xlu1 %431 }
 0x200   : > { %vm433_vm11 = vcmp.eq.f32.partialorder %v430_v23, %v432_v25  ;;  %v438_v28 = vcvt.f32.s32 %v432_v25 }
 0x201   : > { %v434_v27 = vsel %vm433_vm11, %v429_v26, inf }
 0x202   : > { %435 = vmin.xlane.f32.xlu0 %v434_v27  ;;  %v439_v32 = vshll.u32 %v438_v28, 16 }
 0x28b   : > { %v436_v30 = vpop.xlane.xlu0 %435 }
 0x28c   : > { %v437_v33 = vcvt.f32.s32 %v436_v30 }
 0x28e   : > { %v947_v35 = vadd.s32 %v439_v32, %v437_v33 }
 0x290   : > { %vm441_vm12 = vcmp.eq.s32.totalorder %v930_v46, %v947_v35  ;;  %vm452_vm13 = vcmp.eq.s32.totalorder %v947_v35, 0  ;;  %vm461_vm14 = vcmp.eq.s32.totalorder %v947_v35, 1  ;;  %vm470_vm15 = vcmp.eq.s32.totalorder %v947_v35, 2 }
 0x291   : > { %v636_v43 = vsel %vm441_vm12, 1.0, %v802_v42  ;;  %v637_v44 = vsel %vm452_vm13, 1.0, %v802_v42  ;;  %v638_v45 = vsel %vm461_vm14, 1.0, %v802_v42  ;;  %v639_v47 = vsel %vm470_vm15, 1.0, %v802_v42 }
 0x292   : > { %v444_v8 = vmul.f32 %v636_v43, %v356_v6  ;;  %v459_v48 = vmul.f32 %v637_v44, %v458_v36  ;;  %v468_v49 = vmul.f32 %v638_v45, %v467_v34  ;;  %vm479_vm0 = vcmp.eq.s32.totalorder %v947_v35, 3 }
 0x293   : > { %vm488_vm1 = vcmp.eq.s32.totalorder %v947_v35, 4  ;;  %vm497_vm2 = vcmp.eq.s32.totalorder %v947_v35, 5  ;;  %vm506_vm3 = vcmp.eq.s32.totalorder %v947_v35, 6  ;;  %v640_v53 = vsel %vm479_vm0, 1.0, %v802_v42 }
 0x294   : > { %v445_v51 = vsel %vm420_vm9, %v444_v8, 0.0  ;;  %v460_v52 = vadd.f32 %v459_v48, %v451_v38  ;;  %v641_v54 = vsel %vm488_vm1, 1.0, %v802_v42  ;;  %v642_v55 = vsel %vm497_vm2, 1.0, %v802_v42 }
 0x295   : > { %446 = vadd.xlane.f32.xlu1 %v445_v51  ;;  %v643_v56 = vsel %vm506_vm3, 1.0, %v802_v42  ;;  %v477_v59 = vmul.f32 %v639_v47, %v476_v39  ;;  %vm515_vm4 = vcmp.eq.s32.totalorder %v947_v35, 7  ;;  %v486_v63 = vmul.f32 %v640_v53, %v485_v50 }
 0x296   : > { %v469_v58 = vadd.f32 %v468_v49, %v460_v52  ;;  %v644_v61 = vsel %vm515_vm4, 1.0, %v802_v42  ;;  %v495_v4 = vmul.f32 %v641_v54, %v494_v60  ;;  %v504_v7 = vmul.f32 %v642_v55, %v503_v0 }
 0x297   : > { %v513_v11 = vmul.f32 %v643_v56, %v512_v5  ;;  %v522_v13 = vmul.f32 %v644_v61, %v521_v9  ;;  %v527_v3 = vcvt.s32.f32 %v947_v35 }
 0x298   : > { %v478_v62 = vadd.f32 %v477_v59, %v469_v58 }
 0x29a   : > { %v487_v2 = vadd.f32 %v486_v63, %v478_v62 }
 0x29c   : > { %v496_v6 = vadd.f32 %v495_v4, %v487_v2 }
 0x29e   : > { %v505_v10 = vadd.f32 %v504_v7, %v496_v6 }
 0x2a0   : > { %v514_v12 = vadd.f32 %v513_v11, %v505_v10 }
 0x2a2   : > { %v523_v14 = vadd.f32 %v522_v13, %v514_v12 }
 0x31e   : > { %v447_v15 = vpop.xlane.xlu1 %446 }
 0x31f   : > { %v525_v16 = vsel %vm524_vm5, %v447_v15, %v523_v14 }
 0x320   : > { %v528_v17 = vsel %vm526_vm6, %v527_v3, %v525_v16 }
 0x321   : > { %529 = vst [vmem:[%s216_s5] sm:$0xff] %v528_v17 }
 0x322   : > { %745 = shalt.err (!%p742_p0)
}
 0x323   : > { %s746_s14 = scalar_lea.hbm %s976_s9, 128  ;;  %s750_s23 = scalar_lea.hbm %s1015_s4, 256 }
 0x324   : > { %p747_p1 = scmp.ne.s32.totalorder %s976_s9, %s746_s14  ;;  %p751_p4 = scmp.lt.s32.totalorder %s976_s9, %s1015_s4 }
 0x325   : > { %p752_p7 = scmp.lt.s32.totalorder %s750_s23, %s746_s14 }
 0x326   : > { %p748_p2 = pnand %p747_p1, %p867_p5 }
 0x327   : > { %p753_p8 = por %p752_p7, %p751_p4 }
 0x328   : > { %p749_p3 = pneg %p748_p2 }
 0x32a   : > { %p754_p6 = pnand %p753_p8, %p749_p3 }
 0x32c   : > { %757 = shalt.err (!%p754_p6)
}
 0x32d   : > { %653 = dma.vmem_to_hbm [thread:$0]  (%p867_p5), %s545_s6, 128, %s976_s9, %s531_s10  }
 0x32e PF: > { %p665_p9 = scmp.ge.s32.totalorder %s796_s18, 2  ;;  %s556_s29 = sand.u32 1, %s784_s15  }
 0x32f   : > { %p1019_p10 = scmp.ne.s32.totalorder %s1017_s26, 0  ;;  %s557_s30 = scalar_lea.sflag [#allocation4], %s556_s29 }
 0x331   : > { %p660_p11 = pnand %p665_p9, %p1019_p10 }
 0x333   : > { %p661_p12 = pneg %p660_p11 }
 0x335   : > { %779 = dma.done.wait (%p661_p12), %s557_s30, 128  }
 0x336   : > { %781 = vsyncadd (%p661_p12), %s557_s30, 4294967168  ;;  %p15_p13 = scmp.ge.s32.totalorder %s854_s21, 4   ;;  %s1020_s15 = smov %s788_s16 }
 0x337   : > { %s1021_s16 = smov %s792_s17  ;;  %s1022_s17 = smov %s865_s24 }
 0x338   : > { %s1023_s18 = smov %s854_s21  ;;  %17 = sbr.rel (!%p15_p13) target bundleno = 4 (0x4), region = 79 }
 0x33d   :  { %562 = vsyncpa [#allocation3], 1 }
 0x33e   :  { %564 = vsyncpa [#allocation3 + $0x1], 1 }
 0x33f   :  { %565 = vsyncpa [#allocation4], 1 }
 0x340   :  { %567 = vsyncpa [#allocation4 + $0x1], 1 }

</bundles_post_ra>
